<compile_context>
chip_gen: v5e
topology: v5e:2x2
jax: 0.10.0
libtpu: 0.0.40
codegen_flags: <defaults>
</compile_context>

<pallas_src>
import functools

import jax
import jax.numpy as jnp
from jax.experimental import pallas as pl
from jax.experimental.pallas import tpu as pltpu


def _leaky_relu(x, slope=0.2):
    return jnp.where(x > 0, x, slope * x)


def _edge_bias_from_adj(adj_i8):
    # int8 adjacency = 4x less HBM->VMEM DMA than f32; build the additive mask
    # once (0 on edges, -1e30 elsewhere) and reuse it for every head.
    return jnp.where(adj_i8.astype(jnp.float32) > 0.0,
                     jnp.float32(0.0), jnp.float32(-1e30))


def _gat_layer_compute(x_src, x_dst, edge_bias, w, al, ar, b, num_heads, f_out):
    """Dense GATConv math on in-register values (shared by both kernels).

    x_src     : (N_src, F_in)  f32   features of all source nodes
    x_dst     : (T_dst, F_in)  f32   features of the destination nodes handled here
    edge_bias : (T_dst, N_src) f32   0.0 where edge u->v exists, -1e30 otherwise
    w         : (F_in, H*F_out) f32, al/ar: (H, F_out), b: (1, H*F_out)
    returns   : (T_dst, H*F_out) f32  == torch.flatten(gat_out, start_dim=1)
    """
    xs = x_src.astype(jnp.bfloat16)
    wb = w.astype(jnp.bfloat16)
    # One bf16 MXU matmul covering every head: lane fill = H*F_out (not F_out),
    # projection done once per layer instead of once per head/grid step.
    hf_src = jnp.dot(xs, wb, preferred_element_type=jnp.float32)        # (N_src, H*F_out)
    if x_dst is x_src:
        hf_dst = hf_src
    else:
        hf_dst = jnp.dot(x_dst.astype(jnp.bfloat16), wb,
                         preferred_element_type=jnp.float32)            # (T_dst, H*F_out)

    outs = []
    for h in range(num_heads):                      # static Python loop, H is tiny
        lo = h * f_out
        hf_s = hf_src[:, lo:lo + f_out]             # (N_src, F_out)
        hf_d = hf_dst[:, lo:lo + f_out]             # (T_dst, F_out)
        el = jnp.sum(hf_s * al[h:h + 1, :], axis=-1, keepdims=True)     # (N_src, 1)
        er = jnp.sum(hf_d * ar[h:h + 1, :], axis=-1, keepdims=True)     # (T_dst, 1)
        # dst-major scores (rows = destinations, cols = sources): the softmax
        # max/sum are lane-axis reductions and the aggregation is a plain
        # row-major matmul (no dim-0 contraction / no (N,N) XLU transpose).
        e = _leaky_relu(er + jnp.transpose(el)) + edge_bias             # (T_dst, N_src)
        m = jnp.max(e, axis=-1, keepdims=True)                          # (T_dst, 1)
        p = jnp.exp(e - m)      # masked entries underflow to exactly 0 (self-loop => m finite)
        denom = jnp.sum(p, axis=-1, keepdims=True)                      # (T_dst, 1)
        agg = jnp.dot(p.astype(jnp.bfloat16), hf_s.astype(jnp.bfloat16),
                      preferred_element_type=jnp.float32)               # (T_dst, F_out)
        # Fold the softmax normalisation into the narrow output (EUP reciprocal
        # + (T, F_out) multiply) instead of dividing the full (T, N) matrix.
        outs.append(agg * pl.reciprocal(denom, approx=True) + b[:, lo:lo + f_out])
    return outs[0] if num_heads == 1 else jnp.concatenate(outs, axis=-1)


def _gacnn_fused_kernel(x_ref, adj_ref, w1_ref, al1_ref, ar1_ref, b1_ref,
                        w2_ref, al2_ref, ar2_ref, b2_ref, o_ref, *,
                        heads1, hidden, heads2, out_dim):
    """Both GAT layers fused into one kernel (small graphs: one launch, no
    intermediate HBM round trip, no transpose kernel between the layers)."""
    edge_bias = _edge_bias_from_adj(adj_ref[...])
    x = x_ref[...]
    h1 = _gat_layer_compute(x, x, edge_bias, w1_ref[...], al1_ref[...],
                            ar1_ref[...], b1_ref[...], heads1, hidden)
    # h1 is already the flattened (N, H1*hidden) torch layout -> feed layer 2 in VMEM.
    h2 = _gat_layer_compute(h1, h1, edge_bias, w2_ref[...], al2_ref[...],
                            ar2_ref[...], b2_ref[...], heads2, out_dim)
    o_ref[...] = h2


def _gat_layer_kernel(x_src_ref, x_dst_ref, adj_ref, w_ref, al_ref, ar_ref,
                      b_ref, o_ref, *, num_heads, f_out):
    """One GATConv layer for one tile of destination nodes (grid over dst tiles)."""
    edge_bias = _edge_bias_from_adj(adj_ref[...])          # (T_dst, N_src)
    o_ref[...] = _gat_layer_compute(
        x_src_ref[...], x_dst_ref[...], edge_bias, w_ref[...], al_ref[...],
        ar_ref[...], b_ref[...], num_heads, f_out)


def gat_layer(x, adj_in, w, attn_l, attn_r, bias, *, dst_tile=256):
    """Dense GATConv, gridded over destination-node tiles.

    Output is (N, H*F_out), i.e. already torch.flatten(out, start_dim=1).
    """
    n, f_in = x.shape
    num_heads, f_out = attn_l.shape
    hfo = num_heads * f_out
    # Destination tile: multiple of 8 sublanes; fall back to the whole graph
    # when it does not divide evenly (keeps the index maps trivial).
    tile = dst_tile if (n > dst_tile and n % dst_tile == 0) else n
    grid = (n // tile,)
    kern = functools.partial(_gat_layer_kernel, num_heads=num_heads, f_out=f_out)
    return pl.pallas_call(
        kern,
        out_shape=jax.ShapeDtypeStruct((n, hfo), jnp.float32),
        grid=grid,
        in_specs=[
            # Grid-invariant blocks (all-source features / weights) are small
            # next to the (tile, N) attention temporaries.
            pl.BlockSpec((n, f_in), lambda i: (0, 0)),          # all source features
            pl.BlockSpec((tile, f_in), lambda i: (i, 0)),       # this tile's dst features
            pl.BlockSpec((tile, n), lambda i: (i, 0)),          # int8 in-adjacency rows
            pl.BlockSpec((f_in, hfo), lambda i: (0, 0)),
            pl.BlockSpec((num_heads, f_out), lambda i: (0, 0)),
            pl.BlockSpec((num_heads, f_out), lambda i: (0, 0)),
            pl.BlockSpec((1, hfo), lambda i: (0, 0)),
        ],
        out_specs=pl.BlockSpec((tile, hfo), lambda i: (i, 0)),  # lane-dense (N, H*F_out)
        compiler_params=pltpu.CompilerParams(
            # dst tiles are independent -> both v7x TensorCores get work.
            dimension_semantics=("parallel",),
            # Sized for (tile, N) f32 temporaries at moderate N; within v7x's
            # 64 MiB and well under v5e/v6e's 128 MiB.
            vmem_limit_bytes=32 * 1024 * 1024,
        ),
    )(x, x, adj_in, w, attn_l, attn_r, bias)


@jax.jit
def gacnn_forward(features, adj_in, params1, params2):
    """GACNN forward: GATConv -> flatten -> GATConv -> squeeze."""
    w1, al1, ar1, b1 = params1
    w2, al2, ar2, b2 = params2
    n = features.shape[0]
    heads1, hidden = al1.shape
    heads2, out_dim = al2.shape

    if n <= 512:
        # Whole graph fits in one VMEM tile: fuse both layers (and the
        # in-between flatten) into a single pallas_call — launch overhead
        # dominates at these sizes.
        kern = functools.partial(_gacnn_fused_kernel, heads1=heads1,
                                 hidden=hidden, heads2=heads2, out_dim=out_dim)
        return pl.pallas_call(
            kern,
            out_shape=jax.ShapeDtypeStruct((n, heads2 * out_dim), jnp.float32),
        )(features, adj_in, w1, al1, ar1, b1, w2, al2, ar2, b2)

    # Larger graphs: one dst-tiled pallas_call per layer.
    # NOTE: for very large N a source-tiled (flash-style online softmax) inner
    # loop would bound the (tile, N) temporaries; not needed at these sizes.
    x = gat_layer(features, adj_in, w1, al1, ar1, b1)   # == torch.flatten(x, 1)
    x = gat_layer(x, adj_in, w2, al2, ar2, b2)          # heads2 == 1 -> == squeeze(dim=1)
    return x


def init_gat_params(key, in_dim, out_dim, num_heads):
    kw, kl, kr = jax.random.split(key, 3)
    scale = 1.0 / jnp.sqrt(jnp.float32(in_dim))
    w = jax.random.normal(kw, (in_dim, num_heads * out_dim), jnp.float32) * scale
    attn_l = jax.random.normal(kl, (num_heads, out_dim), jnp.float32) * 0.1
    attn_r = jax.random.normal(kr, (num_heads, out_dim), jnp.float32) * 0.1
    bias = jnp.zeros((1, num_heads * out_dim), jnp.float32)   # DGL inits bias to zeros
    return w, attn_l, attn_r, bias


def build_ring_in_adjacency(n):
    """int8 in-adjacency A[v, u] = 1 iff edge u->v: ring both ways + self loops."""
    a = jnp.zeros((n, n), jnp.int8)
    idx = jnp.arange(n)
    a = a.at[(idx + 1) % n, idx].set(1)     # u -> u+1
    a = a.at[idx, (idx + 1) % n].set(1)     # u+1 -> u
    a = a.at[idx, idx].set(1)               # dgl.add_self_loop
    return a


# ---------------- pure-JAX reference (correctness check only) ----------------
def _gat_layer_reference(x, adj_in, w, al, ar, b):
    num_heads, f_out = al.shape
    n = x.shape[0]
    hf = (x @ w).reshape(n, num_heads, f_out)
    el = jnp.einsum("nhf,hf->nh", hf, al)
    er = jnp.einsum("nhf,hf->nh", hf, ar)
    e = er[:, None, :] + el[None, :, :]                 # (dst, src, H)
    e = jnp.where(e > 0, e, 0.2 * e)
    mask = (adj_in > 0)[:, :, None]
    e = jnp.where(mask, e, -jnp.inf)
    alpha = jax.nn.softmax(e, axis=1)                   # softmax over sources
    out = jnp.einsum("vuh,uhf->vhf", alpha, hf)
    return out.reshape(n, num_heads * f_out) + b


def gacnn_reference(features, adj_in, params1, params2):
    x = _gat_layer_reference(features, adj_in, *params1)
    return _gat_layer_reference(x, adj_in, *params2)


if __name__ == "__main__":
    num_nodes = 8
    input_dim = 16
    hidden_dim = 8
    output_dim = 4
    num_heads = 2

    key = jax.random.PRNGKey(0)
    k_feat, k_l1, k_l2 = jax.random.split(key, 3)

    features = jax.random.normal(k_feat, (num_nodes, input_dim), jnp.float32)
    adj_in = build_ring_in_adjacency(num_nodes)

    params1 = init_gat_params(k_l1, input_dim, hidden_dim, num_heads)
    params2 = init_gat_params(k_l2, hidden_dim * num_heads, output_dim, 1)

    out = gacnn_forward(features, adj_in, params1, params2)
    out = jax.block_until_ready(out)

    assert out.shape == (num_nodes, output_dim), out.shape
    assert bool(jnp.all(jnp.isfinite(out)))

    ref = gacnn_reference(features, adj_in, params1, params2)
    max_err = float(jnp.max(jnp.abs(out - ref)))
    assert max_err < 1e-1, max_err   # bf16 MXU + approx reciprocal tolerance

    print("KERNEL_OK")
</pallas_src>

<mosaic_0001>
module attributes {stable_mosaic.version = 11 : i64} {
  func.func @_gacnn_fused_kernel(%arg0: memref<8x16xf32, #tpu.memory_space<vmem>>, %arg1: memref<8x8xi8, #tpu.memory_space<vmem>>, %arg2: memref<16x16xf32, #tpu.memory_space<vmem>>, %arg3: memref<2x8xf32, #tpu.memory_space<vmem>>, %arg4: memref<2x8xf32, #tpu.memory_space<vmem>>, %arg5: memref<1x16xf32, #tpu.memory_space<vmem>>, %arg6: memref<16x4xf32, #tpu.memory_space<vmem>>, %arg7: memref<1x4xf32, #tpu.memory_space<vmem>>, %arg8: memref<1x4xf32, #tpu.memory_space<vmem>>, %arg9: memref<1x4xf32, #tpu.memory_space<vmem>>, %arg10: memref<8x4xf32, #tpu.memory_space<vmem>>) attributes {dimension_semantics = [], scalar_prefetch = 0 : i64, scratch_operands = 0 : i64, tpu.core_type = #tpu.core_type<tc>} {
    %c0 = arith.constant 0 : index
    %c0_0 = arith.constant 0 : index
    %0 = vector.load %arg1[%c0, %c0_0] : memref<8x8xi8, #tpu.memory_space<vmem>>, vector<8x8xi8>
    %1 = arith.sitofp %0 : vector<8x8xi8> to vector<8x8xf32>
    %cst = arith.constant 0.000000e+00 : f32
    %2 = vector.broadcast %cst : f32 to vector<8x8xf32>
    %3 = arith.cmpf ogt, %1, %2 : vector<8x8xf32>
    %cst_1 = arith.constant 0.000000e+00 : f32
    %cst_2 = arith.constant -1.000000e+30 : f32
    %4 = vector.broadcast %cst_1 : f32 to vector<8x8xf32>
    %5 = vector.broadcast %cst_2 : f32 to vector<8x8xf32>
    %6 = arith.select %3, %4, %5 : vector<8x8xi1>, vector<8x8xf32>
    %c0_3 = arith.constant 0 : index
    %c0_4 = arith.constant 0 : index
    %7 = vector.load %arg0[%c0_3, %c0_4] : memref<8x16xf32, #tpu.memory_space<vmem>>, vector<8x16xf32>
    %c0_5 = arith.constant 0 : index
    %c0_6 = arith.constant 0 : index
    %8 = vector.load %arg2[%c0_5, %c0_6] : memref<16x16xf32, #tpu.memory_space<vmem>>, vector<16x16xf32>
    %c0_7 = arith.constant 0 : index
    %c0_8 = arith.constant 0 : index
    %9 = vector.load %arg3[%c0_7, %c0_8] : memref<2x8xf32, #tpu.memory_space<vmem>>, vector<2x8xf32>
    %c0_9 = arith.constant 0 : index
    %c0_10 = arith.constant 0 : index
    %10 = vector.load %arg4[%c0_9, %c0_10] : memref<2x8xf32, #tpu.memory_space<vmem>>, vector<2x8xf32>
    %c0_11 = arith.constant 0 : index
    %c0_12 = arith.constant 0 : index
    %11 = vector.load %arg5[%c0_11, %c0_12] : memref<1x16xf32, #tpu.memory_space<vmem>>, vector<1x16xf32>
    %12 = arith.truncf %7 : vector<8x16xf32> to vector<8x16xbf16>
    %13 = arith.truncf %8 : vector<16x16xf32> to vector<16x16xbf16>
    %cst_13 = arith.constant dense<0.000000e+00> : vector<8x16xf32>
    %14 = tpu.matmul %12, %13, %cst_13 {dimension_numbers = #tpu.dot_dimension_numbers<[1], [0], [0], [1], [0, 0, 1, 1], [], []>} : vector<8x16xbf16>, vector<16x16xbf16>, vector<8x16xf32> -> vector<8x16xf32>
    %15 = vector.extract_strided_slice %14 {offsets = [0, 0], sizes = [8, 8], strides = [1, 1]} : vector<8x16xf32> to vector<8x8xf32>
    %16 = vector.extract_strided_slice %14 {offsets = [0, 0], sizes = [8, 8], strides = [1, 1]} : vector<8x16xf32> to vector<8x8xf32>
    %17 = vector.extract_strided_slice %9 {offsets = [0, 0], sizes = [1, 8], strides = [1, 1]} : vector<2x8xf32> to vector<1x8xf32>
    %18 = vector.broadcast %17 : vector<1x8xf32> to vector<8x8xf32>
    %19 = arith.mulf %15, %18 : vector<8x8xf32>
    %cst_14 = arith.constant dense<0.000000e+00> : vector<8xf32>
    %20 = vector.multi_reduction <add>, %19, %cst_14 [1] : vector<8x8xf32> to vector<8xf32>
    %21 = vector.shape_cast %20 : vector<8xf32> to vector<8x1xf32>
    %22 = vector.extract_strided_slice %10 {offsets = [0, 0], sizes = [1, 8], strides = [1, 1]} : vector<2x8xf32> to vector<1x8xf32>
    %23 = vector.broadcast %22 : vector<1x8xf32> to vector<8x8xf32>
    %24 = arith.mulf %16, %23 : vector<8x8xf32>
    %cst_15 = arith.constant dense<0.000000e+00> : vector<8xf32>
    %25 = vector.multi_reduction <add>, %24, %cst_15 [1] : vector<8x8xf32> to vector<8xf32>
    %26 = vector.shape_cast %25 : vector<8xf32> to vector<8x1xf32>
    %27 = tpu.transpose %21, [1, 0] : vector<8x1xf32> -> vector<1x8xf32>
    %28 = vector.broadcast %26 : vector<8x1xf32> to vector<8x8xf32>
    %29 = vector.broadcast %27 : vector<1x8xf32> to vector<8x8xf32>
    %30 = arith.addf %28, %29 : vector<8x8xf32>
    %cst_16 = arith.constant 0.000000e+00 : f32
    %31 = vector.broadcast %cst_16 : f32 to vector<8x8xf32>
    %32 = arith.cmpf ogt, %30, %31 : vector<8x8xf32>
    %cst_17 = arith.constant 2.000000e-01 : f32
    %33 = vector.broadcast %cst_17 : f32 to vector<8x8xf32>
    %34 = arith.mulf %33, %30 : vector<8x8xf32>
    %35 = arith.select %32, %30, %34 : vector<8x8xi1>, vector<8x8xf32>
    %36 = arith.addf %35, %6 : vector<8x8xf32>
    %cst_18 = arith.constant dense<0xFF800000> : vector<8xf32>
    %37 = vector.multi_reduction <maximumf>, %36, %cst_18 [1] : vector<8x8xf32> to vector<8xf32>
    %38 = vector.shape_cast %37 : vector<8xf32> to vector<8x1xf32>
    %39 = vector.broadcast %38 : vector<8x1xf32> to vector<8x8xf32>
    %40 = arith.subf %36, %39 : vector<8x8xf32>
    %41 = math.exp %40 : vector<8x8xf32>
    %cst_19 = arith.constant dense<0.000000e+00> : vector<8xf32>
    %42 = vector.multi_reduction <add>, %41, %cst_19 [1] : vector<8x8xf32> to vector<8xf32>
    %43 = vector.shape_cast %42 : vector<8xf32> to vector<8x1xf32>
    %44 = arith.truncf %41 : vector<8x8xf32> to vector<8x8xbf16>
    %45 = arith.truncf %15 : vector<8x8xf32> to vector<8x8xbf16>
    %cst_20 = arith.constant dense<0.000000e+00> : vector<8x8xf32>
    %46 = tpu.matmul %44, %45, %cst_20 {dimension_numbers = #tpu.dot_dimension_numbers<[1], [0], [0], [1], [0, 0, 1, 1], [], []>} : vector<8x8xbf16>, vector<8x8xbf16>, vector<8x8xf32> -> vector<8x8xf32>
    %47 = tpu.reciprocal %43 {approx = true} : vector<8x1xf32> -> vector<8x1xf32>
    %48 = vector.broadcast %47 : vector<8x1xf32> to vector<8x8xf32>
    %49 = arith.mulf %46, %48 : vector<8x8xf32>
    %50 = vector.extract_strided_slice %11 {offsets = [0, 0], sizes = [1, 8], strides = [1, 1]} : vector<1x16xf32> to vector<1x8xf32>
    %51 = vector.broadcast %50 : vector<1x8xf32> to vector<8x8xf32>
    %52 = arith.addf %49, %51 : vector<8x8xf32>
    %53 = vector.extract_strided_slice %14 {offsets = [0, 8], sizes = [8, 8], strides = [1, 1]} : vector<8x16xf32> to vector<8x8xf32>
    %54 = vector.extract_strided_slice %14 {offsets = [0, 8], sizes = [8, 8], strides = [1, 1]} : vector<8x16xf32> to vector<8x8xf32>
    %55 = vector.extract_strided_slice %9 {offsets = [1, 0], sizes = [1, 8], strides = [1, 1]} : vector<2x8xf32> to vector<1x8xf32>
    %56 = vector.broadcast %55 : vector<1x8xf32> to vector<8x8xf32>
    %57 = arith.mulf %53, %56 : vector<8x8xf32>
    %cst_21 = arith.constant dense<0.000000e+00> : vector<8xf32>
    %58 = vector.multi_reduction <add>, %57, %cst_21 [1] : vector<8x8xf32> to vector<8xf32>
    %59 = vector.shape_cast %58 : vector<8xf32> to vector<8x1xf32>
    %60 = vector.extract_strided_slice %10 {offsets = [1, 0], sizes = [1, 8], strides = [1, 1]} : vector<2x8xf32> to vector<1x8xf32>
    %61 = vector.broadcast %60 : vector<1x8xf32> to vector<8x8xf32>
    %62 = arith.mulf %54, %61 : vector<8x8xf32>
    %cst_22 = arith.constant dense<0.000000e+00> : vector<8xf32>
    %63 = vector.multi_reduction <add>, %62, %cst_22 [1] : vector<8x8xf32> to vector<8xf32>
    %64 = vector.shape_cast %63 : vector<8xf32> to vector<8x1xf32>
    %65 = tpu.transpose %59, [1, 0] : vector<8x1xf32> -> vector<1x8xf32>
    %66 = vector.broadcast %64 : vector<8x1xf32> to vector<8x8xf32>
    %67 = vector.broadcast %65 : vector<1x8xf32> to vector<8x8xf32>
    %68 = arith.addf %66, %67 : vector<8x8xf32>
    %cst_23 = arith.constant 0.000000e+00 : f32
    %69 = vector.broadcast %cst_23 : f32 to vector<8x8xf32>
    %70 = arith.cmpf ogt, %68, %69 : vector<8x8xf32>
    %cst_24 = arith.constant 2.000000e-01 : f32
    %71 = vector.broadcast %cst_24 : f32 to vector<8x8xf32>
    %72 = arith.mulf %71, %68 : vector<8x8xf32>
    %73 = arith.select %70, %68, %72 : vector<8x8xi1>, vector<8x8xf32>
    %74 = arith.addf %73, %6 : vector<8x8xf32>
    %cst_25 = arith.constant dense<0xFF800000> : vector<8xf32>
    %75 = vector.multi_reduction <maximumf>, %74, %cst_25 [1] : vector<8x8xf32> to vector<8xf32>
    %76 = vector.shape_cast %75 : vector<8xf32> to vector<8x1xf32>
    %77 = vector.broadcast %76 : vector<8x1xf32> to vector<8x8xf32>
    %78 = arith.subf %74, %77 : vector<8x8xf32>
    %79 = math.exp %78 : vector<8x8xf32>
    %cst_26 = arith.constant dense<0.000000e+00> : vector<8xf32>
    %80 = vector.multi_reduction <add>, %79, %cst_26 [1] : vector<8x8xf32> to vector<8xf32>
    %81 = vector.shape_cast %80 : vector<8xf32> to vector<8x1xf32>
    %82 = arith.truncf %79 : vector<8x8xf32> to vector<8x8xbf16>
    %83 = arith.truncf %53 : vector<8x8xf32> to vector<8x8xbf16>
    %cst_27 = arith.constant dense<0.000000e+00> : vector<8x8xf32>
    %84 = tpu.matmul %82, %83, %cst_27 {dimension_numbers = #tpu.dot_dimension_numbers<[1], [0], [0], [1], [0, 0, 1, 1], [], []>} : vector<8x8xbf16>, vector<8x8xbf16>, vector<8x8xf32> -> vector<8x8xf32>
    %85 = tpu.reciprocal %81 {approx = true} : vector<8x1xf32> -> vector<8x1xf32>
    %86 = vector.broadcast %85 : vector<8x1xf32> to vector<8x8xf32>
    %87 = arith.mulf %84, %86 : vector<8x8xf32>
    %88 = vector.extract_strided_slice %11 {offsets = [0, 8], sizes = [1, 8], strides = [1, 1]} : vector<1x16xf32> to vector<1x8xf32>
    %89 = vector.broadcast %88 : vector<1x8xf32> to vector<8x8xf32>
    %90 = arith.addf %87, %89 : vector<8x8xf32>
    %91 = tpu.concatenate %52, %90 in 1 : vector<8x8xf32>, vector<8x8xf32> -> vector<8x16xf32>
    %c0_28 = arith.constant 0 : index
    %c0_29 = arith.constant 0 : index
    %92 = vector.load %arg6[%c0_28, %c0_29] : memref<16x4xf32, #tpu.memory_space<vmem>>, vector<16x4xf32>
    %c0_30 = arith.constant 0 : index
    %c0_31 = arith.constant 0 : index
    %93 = vector.load %arg7[%c0_30, %c0_31] : memref<1x4xf32, #tpu.memory_space<vmem>>, vector<1x4xf32>
    %c0_32 = arith.constant 0 : index
    %c0_33 = arith.constant 0 : index
    %94 = vector.load %arg8[%c0_32, %c0_33] : memref<1x4xf32, #tpu.memory_space<vmem>>, vector<1x4xf32>
    %c0_34 = arith.constant 0 : index
    %c0_35 = arith.constant 0 : index
    %95 = vector.load %arg9[%c0_34, %c0_35] : memref<1x4xf32, #tpu.memory_space<vmem>>, vector<1x4xf32>
    %96 = arith.truncf %91 : vector<8x16xf32> to vector<8x16xbf16>
    %97 = arith.truncf %92 : vector<16x4xf32> to vector<16x4xbf16>
    %cst_36 = arith.constant dense<0.000000e+00> : vector<8x4xf32>
    %98 = tpu.matmul %96, %97, %cst_36 {dimension_numbers = #tpu.dot_dimension_numbers<[1], [0], [0], [1], [0, 0, 1, 1], [], []>} : vector<8x16xbf16>, vector<16x4xbf16>, vector<8x4xf32> -> vector<8x4xf32>
    %99 = vector.broadcast %93 : vector<1x4xf32> to vector<8x4xf32>
    %100 = arith.mulf %98, %99 : vector<8x4xf32>
    %cst_37 = arith.constant dense<0.000000e+00> : vector<8xf32>
    %101 = vector.multi_reduction <add>, %100, %cst_37 [1] : vector<8x4xf32> to vector<8xf32>
    %102 = vector.shape_cast %101 : vector<8xf32> to vector<8x1xf32>
    %103 = vector.broadcast %94 : vector<1x4xf32> to vector<8x4xf32>
    %104 = arith.mulf %98, %103 : vector<8x4xf32>
    %cst_38 = arith.constant dense<0.000000e+00> : vector<8xf32>
    %105 = vector.multi_reduction <add>, %104, %cst_38 [1] : vector<8x4xf32> to vector<8xf32>
    %106 = vector.shape_cast %105 : vector<8xf32> to vector<8x1xf32>
    %107 = tpu.transpose %102, [1, 0] : vector<8x1xf32> -> vector<1x8xf32>
    %108 = vector.broadcast %106 : vector<8x1xf32> to vector<8x8xf32>
    %109 = vector.broadcast %107 : vector<1x8xf32> to vector<8x8xf32>
    %110 = arith.addf %108, %109 : vector<8x8xf32>
    %cst_39 = arith.constant 0.000000e+00 : f32
    %111 = vector.broadcast %cst_39 : f32 to vector<8x8xf32>
    %112 = arith.cmpf ogt, %110, %111 : vector<8x8xf32>
    %cst_40 = arith.constant 2.000000e-01 : f32
    %113 = vector.broadcast %cst_40 : f32 to vector<8x8xf32>
    %114 = arith.mulf %113, %110 : vector<8x8xf32>
    %115 = arith.select %112, %110, %114 : vector<8x8xi1>, vector<8x8xf32>
    %116 = arith.addf %115, %6 : vector<8x8xf32>
    %cst_41 = arith.constant dense<0xFF800000> : vector<8xf32>
    %117 = vector.multi_reduction <maximumf>, %116, %cst_41 [1] : vector<8x8xf32> to vector<8xf32>
    %118 = vector.shape_cast %117 : vector<8xf32> to vector<8x1xf32>
    %119 = vector.broadcast %118 : vector<8x1xf32> to vector<8x8xf32>
    %120 = arith.subf %116, %119 : vector<8x8xf32>
    %121 = math.exp %120 : vector<8x8xf32>
    %cst_42 = arith.constant dense<0.000000e+00> : vector<8xf32>
    %122 = vector.multi_reduction <add>, %121, %cst_42 [1] : vector<8x8xf32> to vector<8xf32>
    %123 = vector.shape_cast %122 : vector<8xf32> to vector<8x1xf32>
    %124 = arith.truncf %121 : vector<8x8xf32> to vector<8x8xbf16>
    %125 = arith.truncf %98 : vector<8x4xf32> to vector<8x4xbf16>
    %cst_43 = arith.constant dense<0.000000e+00> : vector<8x4xf32>
    %126 = tpu.matmul %124, %125, %cst_43 {dimension_numbers = #tpu.dot_dimension_numbers<[1], [0], [0], [1], [0, 0, 1, 1], [], []>} : vector<8x8xbf16>, vector<8x4xbf16>, vector<8x4xf32> -> vector<8x4xf32>
    %127 = tpu.reciprocal %123 {approx = true} : vector<8x1xf32> -> vector<8x1xf32>
    %128 = vector.broadcast %127 : vector<8x1xf32> to vector<8x4xf32>
    %129 = arith.mulf %126, %128 : vector<8x4xf32>
    %130 = vector.broadcast %95 : vector<1x4xf32> to vector<8x4xf32>
    %131 = arith.addf %129, %130 : vector<8x4xf32>
    %c0_44 = arith.constant 0 : index
    %c0_45 = arith.constant 0 : index
    %132 = vector.load %arg10[%c0_44, %c0_45] : memref<8x4xf32, #tpu.memory_space<vmem>>, vector<8x4xf32>
    tpu.vector_store %arg10[%c0_44, %c0_45], %131 {strides = array<i32>} : memref<8x4xf32, #tpu.memory_space<vmem>>, vector<8x4xf32>,
    return
  }
}

</mosaic_0001>

<bundles_post_ra>
// kernel: gacnn_forward.1
= control target key start
LH: loop header
LB: loop body
LE: loop exit
PB: predicated region body
PF: predicated region fallthrough
CT: control target
= control target key end

     0   :  { %15 = vsyncpa [#allocation3], 0  ;;  %s618_s0 = inlined_call_operand.hbm [shape: f32[8,16], index: 0, kind: input, shape index: {}]   ;;  %s619_s1 = inlined_call_operand.vmem [shape: s8[8,8], index: 1, kind: input, shape index: {}]   ;;  %s620_s2 = inlined_call_operand.vmem [shape: f32[16,16], index: 2, kind: input, shape index: {}]   ;;  %s621_s3 = inlined_call_operand.vmem [shape: f32[2,8], index: 3, kind: input, shape index: {}]   ;;  %s622_s4 = inlined_call_operand.hbm [shape: f32[2,8], index: 4, kind: input, shape index: {}]   ;;  %s623_s5 = inlined_call_operand.vmem [shape: f32[1,16], index: 5, kind: input, shape index: {}]   ;;  %s624_s6 = inlined_call_operand.vmem [shape: f32[16,4], index: 6, kind: input, shape index: {}]   ;;  %s625_s7 = inlined_call_operand.vmem [shape: f32[1,4], index: 7, kind: input, shape index: {}]   ;;  %s626_s8 = inlined_call_operand.vmem [shape: f32[1,4], index: 8, kind: input, shape index: {}]   ;;  %s627_s9 = inlined_call_operand.vmem [shape: f32[1,4], index: 9, kind: input, shape index: {}]   ;;  %s628_s10 = inlined_call_operand.vmem [shape: f32[8,4], index: 10, kind: output, shape index: {}]  }
   0x1   :  { %s22_s15 = sshll.u32 %s618_s0, 4  ;;  %s23_s15 = int_to_ptr.hbm [resolvable:$true] %s22_s15 }
   0x2   :  { %16 = vsyncpa [#allocation5], 0  ;;  %s485_s16 = smov [#allocation2]   ;;  %s39_s20 = sshll.u32 %s622_s4, 4  ;;  %s40_s20 = int_to_ptr.hbm [resolvable:$true] %s39_s20 }
   0x3   :  { %s24_s17 = sshll.u32 %s485_s16, 4  ;;  %s486_s21 = smov [#allocation4]   ;;  %s25_s17 = int_to_ptr.vmem [resolvable:$true] %s24_s17 }
   0x4   :  { %27 = dma.hbm_to_vmem [thread:$0]  %s23_s15, 128, %s25_s17, [#allocation3]  }
   0x5   :  { %s41_s22 = sshll.u32 %s486_s21, 4  ;;  %s42_s22 = int_to_ptr.vmem [resolvable:$true] %s41_s22 }
   0x6   :  { %44 = dma.hbm_to_vmem [thread:$0]  %s40_s20, 32, %s42_s22, [#allocation5]  }
   0x7   :  { %481 = dma.done.wait [#allocation3], 128  }
   0x8   :  { %482 = vsyncadd [#allocation3], 4294967168 }
   0x9   :  { %483 = dma.done.wait [#allocation5], 32  }
   0xa   :  { %484 = vsyncadd [#allocation5], 4294967264  ;;  %v70_v0 = vld [vmem:[%s620_s2] sm:$0xff]  ;;  %v71_v1 = vld [vmem:[%s620_s2 + $0x8] sm:$0xff]  ;;  %vm77_vm0 = vcmask 130048   ;;  %s487_s27 = smov 8  }
   0xb   :  { %v69_v2 = vld [vmem:[#allocation2] sm:$0xff]  ;;  %v76_v3 = vpack.c.bf16 %v71_v1, %v70_v0  ;;  %v73_v7 = vld [vmem:[#allocation4] sm:$0x3]  ;;  %vm157_vm1 = vcmask 1043456   ;;  %s488_s2 = smov 120   ;;  %vm96_vm2 = vcmask 64512  }
   0xc   :  { %v72_v4 = vld [vmem:[%s621_s3] sm:$0x3]  ;;  %v75_v5 = vpack.c.bf16 %v69_v2, %v69_v2  ;;  %v193_v8 = vperm.slane %v73_v7, 1  ;;  %v100_v24 = vperm.slane %v73_v7, 0  ;;  %v489_v37 = vmov -1e+30  }
   0xd   :  { %v180_v6 = vperm.slane %v72_v4, 1  ;;  %88 = vmatpush.bf16.msra.mxu0 %v76_v3  ;;  %v94_v17 = vperm.slane %v72_v4, 0  ;;  %v64_v29 = vld [vmem:[%s619_s1] sm:$0x3]  ;;  %vm314_vm6 = vcmask 31744  }
   0xe   :  { %v65_v30 = vunpack.c.0.s8 %v64_v29  ;;  %v417_v50 = vld [vmem:[%s623_s5] ss:$0 sm:$0xff] }
   0xf   :  { %182 = vrot.lane.b32.xlu0 %v180_v6, %s487_s27 }
  0x10   :  { %406 = vmatmul.msk.bf16.vlgmr.msra.gmra.mxu0 %vm77_vm0, %v75_v5  ;;  %v66_v31 = vcvt.s32.f32 %v65_v30 }
  0x12   :  { %vm67_vm3 = vcmp.gt.f32.partialorder %v66_v31, 0.0 }
  0x13   :  { %v573_v38 = vsel %vm67_vm3, 0.0, %v489_v37 }
  0x17   :  { %195 = vrot.lane.b32.xlu0 %v193_v8, %s487_s27 }
  0x81   :  { %v183_v9 = vpop.permute.xlu0 %182 }
  0x89   :  { %v196_v14 = vpop.permute.xlu0 %195 }
  0x8d   :  { %v90_v10 = vpop.f32.mrf.mxu0 }
  0x8e   :  { %v185_v11 = vmul.f32 %v183_v9, %v90_v10  ;;  %v153_v12 = vpack.c.bf16 %v90_v10, %v90_v10  ;;  %v198_v16 = vmul.f32 %v196_v14, %v90_v10  ;;  %v95_v18 = vmul.f32 %v94_v17, %v90_v10  ;;  %v287_v9 = vld [vmem:[%s624_s6] sm:$0xff] }
  0x8f   :  { %v101_v25 = vmul.f32 %v100_v24, %v90_v10  ;;  %v288_v10 = vld [vmem:[%s624_s6 + $0x8] sm:$0xff] }
  0x90   :  { %187 = vrot.lane.b32.xlu1 %v185_v11, %s488_s2  ;;  %v159_v13 = vsel %vm157_vm1, %v153_v12, 0  ;;  %v97_v19 = vsel %vm96_vm2, %v95_v18, 0.0  ;;  %v293_v11 = vpack.c.bf16 %v288_v10, %v287_v9 }
  0x91   :  { %168 = vmatpush.bf16.msra.mxu1 %v159_v13  ;;  %v102_v26 = vsel %vm96_vm2, %v101_v25, 0.0 }
  0x92   :  { %304 = vmatpush.bf16.msra.mxu3 %v293_v11 }
  0x95   :  { %v92_v15 = vpop.f32.mrf.mxu0 }
  0x98   :  { %200 = vrot.lane.b32.xlu1 %v198_v16, %s488_s2 }
  0xc2   :  { %98 = vadd.xlane.f32.xlu1 %v97_v19 }
  0xdb   :  { %278 = vrot.lane.b32.xlu1 %v417_v50, %s488_s2 }
 0x102   :  { %v188_v20 = vpop.permute.xlu1 %187 }
 0x103   :  { %v190_v21 = vsel %vm96_vm2, %v188_v20, 0.0  ;;  %v418_v20 = vld [vmem:[%s626_s8] ss:$0 sm:$0xff] }
 0x104   :  { %191 = vadd.xlane.f32.xlu2 %v190_v21  ;;  %v419_v21 = vld [vmem:[%s625_s7] ss:$0 sm:$0xff] }
 0x10a   :  { %v201_v22 = vpop.permute.xlu1 %200 }
 0x10b   :  { %v203_v23 = vsel %vm96_vm2, %v201_v22, 0.0 }
 0x10c   :  { %204 = vadd.xlane.f32.xlu2 %v203_v23 }
 0x114   :  { %103 = vadd.xlane.f32.xlu2 %v102_v26 }
 0x135   :  { %v99_v28 = vpop.xlane.xlu1 %98 }
 0x14d   :  { %v279_v4 = vpop.permute.xlu1 %278 }
 0x177   :  { %v192_v27 = vpop.xlane.xlu2 %191 }
 0x178   :  { %206 = vxpose.xlu0.b32.start.end [1/1] (short) (narrow) %v192_v27, 8 }
 0x17f   :  { %v205_v34 = vpop.xlane.xlu2 %204 }
 0x180   :  { %105 = vxpose.xlu0.b32.start.end [1/1] (short) (narrow) %v99_v28, 8 }
 0x187   :  { %v104_v44 = vpop.xlane.xlu2 %103 }
 0x21c   :  { %v222_v32 = vpop.trf.xlu0 }
 0x21d   :  { %v238_v33 = vperm.slane %v222_v32, 0 }
 0x21f   :  { %v239_v35 = vadd.f32 %v238_v33, %v205_v34 }
 0x221   :  { %v241_v36 = vmul.f32 0.2, %v239_v35  ;;  %vm240_vm4 = vcmp.gt.f32.partialorder %v239_v35, 0.0 }
 0x223   :  { %v242_v39 = vsel %vm240_vm4, %v239_v35, %v241_v36 }
 0x224   :  { %v243_v40 = vadd.f32 %v242_v39, %v573_v38  ;;  %v121_v42 = vpop.trf.xlu0 }
 0x225   :  { %v137_v43 = vperm.slane %v121_v42, 0 }
 0x226   :  { %v244_v41 = vsel %vm96_vm2, %v243_v40, -inf }
 0x227   :  { %245 = vmax.xlane.f32.xlu2 %v244_v41  ;;  %v138_v45 = vadd.f32 %v137_v43, %v104_v44 }
 0x229   :  { %v140_v46 = vmul.f32 0.2, %v138_v45  ;;  %vm139_vm5 = vcmp.gt.f32.partialorder %v138_v45, 0.0 }
 0x22b   :  { %v141_v47 = vsel %vm139_vm5, %v138_v45, %v140_v46 }
 0x22c   :  { %v142_v48 = vadd.f32 %v141_v47, %v573_v38 }
 0x22e   :  { %v143_v49 = vsel %vm96_vm2, %v142_v48, -inf }
 0x23f   :  { %255 = vrot.lane.b32.xlu2 %v153_v12, %s488_s2 }
 0x268   :  { %144 = vmax.xlane.f32.xlu2 %v143_v49 }
 0x29a   :  { %v246_v51 = vpop.xlane.xlu2 %245 }
 0x29b   :  { %v247_v52 = vsub.f32 %v243_v40, %v246_v51 }
 0x29d   :  { %v248_v53 = vmul.f32 1.442695, %v247_v52 }
 0x29f   :  { %421 = vpow2.f32 %v248_v53 }
 0x2a2   :  { %v256_v54 = vpop.permute.xlu2 %255 }
 0x2a3   :  { %v261_v55 = vsel %vm157_vm1, %v256_v54, 0 }
 0x2a4   :  { %270 = vmatpush.bf16.msra.mxu2 %v261_v55 }
 0x2a5   :  { %v422_v56 = vpop.eup %421 }
 0x2a6   :  { %v250_v57 = vsel %vm96_vm2, %v422_v56, 0.0  ;;  %v253_v58 = vpack.c.bf16 %v422_v56, %v422_v56 }
 0x2a7   :  { %251 = vadd.xlane.f32.xlu0 %v250_v57 }
 0x2a8   :  { %408 = vmatmul.msk.bf16.vlgmr.msra.gmra.mxu2 %vm96_vm2, %v253_v58 }
 0x2db   :  { %v145_v59 = vpop.xlane.xlu2 %144 }
 0x2dc   :  { %v146_v60 = vsub.f32 %v142_v48, %v145_v59 }
 0x2de   :  { %v147_v61 = vmul.f32 1.442695, %v146_v60 }
 0x2e0   :  { %423 = vpow2.f32 %v147_v61 }
 0x2e6   :  { %v424_v62 = vpop.eup %423 }
 0x2e7   :  { %v149_v63 = vsel %vm96_vm2, %v424_v62, 0.0  ;;  %v152_v0 = vpack.c.bf16 %v424_v62, %v424_v62 }
 0x2e8   :  { %150 = vadd.xlane.f32.xlu1 %v149_v63 }
 0x2e9   :  { %407 = vmatmul.msk.bf16.vlgmr.msra.gmra.mxu1 %vm96_vm2, %v152_v0 }
 0x31a   :  { %v252_v1 = vpop.xlane.xlu0 %251 }
 0x31b   :  { %425 = vrcp.f32 %v252_v1 }
 0x321   :  { %v426_v2 = vpop.eup %425 }
 0x32b   :  { %v272_v3 = vpop.f32.mrf.mxu2 }
 0x32c   :  { %v277_v5 = vmul.f32 %v426_v2, %v272_v3 }
 0x32e   :  { %v281_v6 = vadd.f32 %v279_v4, %v277_v5 }
 0x330   :  { %283 = vrot.lane.b32.xlu2 %v281_v6, %s487_s27 }
 0x333   :  { %v274_v7 = vpop.f32.mrf.mxu2 }
 0x35b   :  { %v151_v13 = vpop.xlane.xlu1 %150 }
 0x35c   :  { %427 = vrcp.f32 %v151_v13 }
 0x362   :  { %v428_v14 = vpop.eup %427 }
 0x366   :  { %v170_v8 = vpop.f32.mrf.mxu1 }
 0x367   :  { %v175_v15 = vmul.f32 %v428_v14, %v170_v8 }
 0x369   :  { %v179_v16 = vadd.f32 %v417_v50, %v175_v15 }
 0x36e   :  { %v172_v12 = vpop.f32.mrf.mxu1 }
 0x38a   :  { %v284_v17 = vpop.permute.xlu2 %283 }
 0x38b   :  { %v286_v18 = vsel %vm96_vm2, %v179_v16, %v284_v17 }
 0x38c   :  { %v292_v19 = vpack.c.bf16 %v286_v18, %v286_v18 }
 0x38e   :  { %409 = vmatmul.msk.bf16.vlgmr.msra.gmra.mxu3 %vm77_vm0, %v292_v19 }
 0x411   :  { %v306_v22 = vpop.f32.mrf.mxu3 }
 0x412   :  { %v373_v23 = vpack.c.bf16 %v306_v22, %v306_v22  ;;  %v321_v24 = vmul.f32 %v418_v20, %v306_v22  ;;  %v313_v25 = vmul.f32 %v419_v21, %v306_v22 }
 0x414   :  { %v378_v26 = vsel %vm157_vm1, %v373_v23, 0  ;;  %v322_v27 = vsel %vm314_vm6, %v321_v24, 0.0  ;;  %v315_v28 = vsel %vm314_vm6, %v313_v25, 0.0 }
 0x415   :  { %387 = vmatpush.bf16.msrb.mxu0 %v378_v26  ;;  %323 = vadd.xlane.f32.xlu1 %v322_v27 }
 0x416   :  { %316 = vadd.xlane.f32.xlu2 %v315_v28 }
 0x419   :  { %v308_v29 = vpop.f32.mrf.mxu3 }
 0x488   :  { %v324_v31 = vpop.xlane.xlu1 %323 }
 0x489   :  { %v317_v30 = vpop.xlane.xlu2 %316 }
 0x48a   :  { %325 = vxpose.xlu1.b32.start.end [1/1] (short) (narrow) %v317_v30, 8 }
 0x52e   :  { %v341_v32 = vpop.trf.xlu1 }
 0x52f   :  { %v357_v33 = vperm.slane %v341_v32, 0 }
 0x531   :  { %v358_v34 = vadd.f32 %v357_v33, %v324_v31 }
 0x533   :  { %v360_v35 = vmul.f32 0.2, %v358_v34  ;;  %vm359_vm7 = vcmp.gt.f32.partialorder %v358_v34, 0.0 }
 0x535   :  { %v361_v36 = vsel %vm359_vm7, %v358_v34, %v360_v35 }
 0x536   :  { %v362_v37 = vadd.f32 %v361_v36, %v573_v38  ;;  %v420_v38 = vld [vmem:[%s627_s9] ss:$0 sm:$0xff] }
 0x538   :  { %v363_v39 = vsel %vm96_vm2, %v362_v37, -inf }
 0x539   :  { %364 = vmax.xlane.f32.xlu2 %v363_v39 }
 0x5ac   :  { %v365_v40 = vpop.xlane.xlu2 %364 }
 0x5ad   :  { %v366_v41 = vsub.f32 %v362_v37, %v365_v40 }
 0x5af   :  { %v367_v42 = vmul.f32 1.442695, %v366_v41 }
 0x5b1   :  { %429 = vpow2.f32 %v367_v42 }
 0x5b7   :  { %v430_v43 = vpop.eup %429 }
 0x5b8   :  { %v369_v44 = vsel %vm96_vm2, %v430_v43, 0.0  ;;  %v372_v45 = vpack.c.bf16 %v430_v43, %v430_v43 }
 0x5b9   :  { %370 = vadd.xlane.f32.xlu2 %v369_v44 }
 0x5ba   :  { %410 = vmatmul.msk.bf16.vlgmr.msrb.gmra.mxu0 %vm96_vm2, %v372_v45 }
 0x62c   :  { %v371_v46 = vpop.xlane.xlu2 %370 }
 0x62d   :  { %431 = vrcp.f32 %v371_v46 }
 0x633   :  { %v432_v47 = vpop.eup %431 }
 0x637   :  { %v389_v48 = vpop.f32.mrf.mxu0 }
 0x638   :  { %v394_v49 = vmul.f32 %v432_v47, %v389_v48 }
 0x63a   :  { %v398_v50 = vadd.f32 %v420_v38, %v394_v49 }
 0x63c   :  { %399 = vst.msk [vmem:[%s628_s10] sm:$0xff] %vm314_vm6, %v398_v50 }
 0x63f   :  { %v391_v51 = vpop.f32.mrf.mxu0 }
 0x640   :  { %404 = vsyncpa [#allocation3], 1 }
 0x641   :  { %405 = vsyncpa [#allocation5], 1 }

</bundles_post_ra>
